<compile_context>
chip_gen: v6e
topology: v6e:2x2x1
jax: 0.10.0
libtpu: 0.0.40
codegen_flags: <defaults>
</compile_context>

<pallas_src>
import functools

import jax
import jax.numpy as jnp
from jax import lax
from jax.experimental import pallas as pl
from jax.experimental.pallas import tpu as pltpu


# ----------------------------- Pallas kernels ------------------------------

def _fact_train_kernel(sig_ref, x_ref, uw_ref, ei_ref, ejc_ref, ub_ref,
                       ejr_ref, o_ref, acc_ref, *, dot_dtype):
    """Factorized NoisyNet training forward.

    sig_ref : SMEM (1, 2) -> [sigma_w, sigma_b] scalars
    x_ref   : (tm, tk)      input tile
    uw_ref  : (tn, tk)      mean-weight tile (PyTorch (A, D) layout)
    ei_ref  : (1, tk)       f(eps_i) slice (lane-dense)
    ejc_ref : (tn, 1)       f(eps_j) column slice (for the outer product)
    ub_ref  : (1, tn)       mean bias
    ejr_ref : (1, tn)       f(eps_j) row slice (for the noisy bias)
    """
    k = pl.program_id(2)

    @pl.when(k == 0)
    def _():
        acc_ref[...] = jnp.zeros_like(acc_ref)

    # Noisy weight tile built on the VPU in f32: u + sigma * (eps_j ⊗ eps_i).
    sw = sig_ref[0, 0]
    w = uw_ref[...] + sw * (ejc_ref[...] * ei_ref[...])          # (tn, tk)

    # MXU: contract the shared D axis (no explicit transpose of w).
    acc_ref[...] += lax.dot_general(
        x_ref[...].astype(dot_dtype), w.astype(dot_dtype),
        dimension_numbers=(((1,), (1,)), ((), ())),
        preferred_element_type=jnp.float32)

    @pl.when(k == pl.num_programs(2) - 1)
    def _():
        sb = sig_ref[0, 1]
        bias = ub_ref[...] + sb * ejr_ref[...]                   # (1, tn)
        o_ref[...] = (acc_ref[...] + bias).astype(o_ref.dtype)


def _full_train_kernel(x_ref, uw_ref, sw_ref, ew_ref, ub_ref, sb_ref, eb_ref,
                       o_ref, acc_ref, *, dot_dtype):
    """Non-factorized (independent-noise) training forward."""
    k = pl.program_id(2)

    @pl.when(k == 0)
    def _():
        acc_ref[...] = jnp.zeros_like(acc_ref)

    w = uw_ref[...] + sw_ref[...] * ew_ref[...]                  # (tn, tk)
    acc_ref[...] += lax.dot_general(
        x_ref[...].astype(dot_dtype), w.astype(dot_dtype),
        dimension_numbers=(((1,), (1,)), ((), ())),
        preferred_element_type=jnp.float32)

    @pl.when(k == pl.num_programs(2) - 1)
    def _():
        bias = ub_ref[...] + sb_ref[...] * eb_ref[...]           # (1, tn)
        o_ref[...] = (acc_ref[...] + bias).astype(o_ref.dtype)


def _eval_kernel(x_ref, uw_ref, ub_ref, o_ref, acc_ref, *, dot_dtype):
    """Eval forward: plain linear with mean weights/bias."""
    k = pl.program_id(2)

    @pl.when(k == 0)
    def _():
        acc_ref[...] = jnp.zeros_like(acc_ref)

    acc_ref[...] += lax.dot_general(
        x_ref[...].astype(dot_dtype), uw_ref[...].astype(dot_dtype),
        dimension_numbers=(((1,), (1,)), ((), ())),
        preferred_element_type=jnp.float32)

    @pl.when(k == pl.num_programs(2) - 1)
    def _():
        o_ref[...] = (acc_ref[...] + ub_ref[...]).astype(o_ref.dtype)


# ------------------------------- Wrapper ------------------------------------

def _round_up(n, m):
    return ((n + m - 1) // m) * m


def _pick_tile(total, candidates):
    for c in candidates:
        if total % c == 0:
            return c
    return total


def _pad2(a, rows, cols):
    r, c = a.shape
    if r == rows and c == cols:
        return a
    return jnp.pad(a, ((0, rows - r), (0, cols - c)))


@functools.partial(jax.jit, static_argnames=("training", "dot_dtype"))
def noisy_forward(x, params, training=True, dot_dtype=jnp.bfloat16):
    """x: (B, D) float32.  Returns (B, A) in x.dtype.

    Factorized params: u_w (A,D), u_b (A,), sigma_w ()/scalar, sigma_b ()/scalar,
                       eps_i (D,), eps_j (A,)   (noise never materialized as AxD)
    Non-factorized:    u_w (A,D), sigma_w (A,D), eps_w (A,D),
                       u_b (A,),  sigma_b (A,),  eps_b (A,)
    """
    B, D = x.shape
    A = params["u_w"].shape[0]
    factorized = "eps_i" in params

    # Lane-dense padding: last dims to multiples of 128, batch to multiple of 8.
    B_pad = _round_up(B, 8)
    D_pad = _round_up(D, 128)
    A_pad = _round_up(A, 128)

    tm = _pick_tile(B_pad, (256, 128, 64, 32, 16, 8))
    tn = _pick_tile(A_pad, (256, 128))
    tk = _pick_tile(D_pad, (512, 256, 128))
    grid = (B_pad // tm, A_pad // tn, D_pad // tk)

    x_p = _pad2(x, B_pad, D_pad)
    uw_p = _pad2(params["u_w"], A_pad, D_pad)
    ub_p = _pad2(params["u_b"].reshape(1, A), 1, A_pad)

    x_spec = pl.BlockSpec((tm, tk), lambda i, j, k: (i, k))
    w_spec = pl.BlockSpec((tn, tk), lambda i, j, k: (j, k))
    row_a_spec = pl.BlockSpec((1, tn), lambda i, j, k: (0, j))
    out_spec = pl.BlockSpec((tm, tn), lambda i, j, k: (i, j))

    out_shape = jax.ShapeDtypeStruct((B_pad, A_pad), x.dtype)
    scratch = [pltpu.VMEM((tm, tn), jnp.float32)]
    cparams = pltpu.CompilerParams(
        dimension_semantics=("parallel", "parallel", "arbitrary"))
    # VMEM footprint at the largest tiles (~a few MiB) is well under the 32 MiB
    # scoped default on v5e/v6e/v7x, so no vmem_limit_bytes override is needed.

    if not training:
        out_p = pl.pallas_call(
            functools.partial(_eval_kernel, dot_dtype=dot_dtype),
            out_shape=out_shape,
            grid=grid,
            in_specs=[x_spec, w_spec, row_a_spec],
            out_specs=out_spec,
            scratch_shapes=scratch,
            compiler_params=cparams,
        )(x_p, uw_p, ub_p)
    elif factorized:
        ei_p = _pad2(params["eps_i"].reshape(1, D), 1, D_pad)
        ejr_p = _pad2(params["eps_j"].reshape(1, A), 1, A_pad)
        ejc_p = _pad2(params["eps_j"].reshape(A, 1), A_pad, 1)
        # sigma_w / sigma_b are scalars in the factorized parameterization
        # (sigma/sqrt(p) from init) -> ship them through SMEM, not HBM streams.
        sig = jnp.stack([
            jnp.asarray(params["sigma_w"], jnp.float32).reshape(()),
            jnp.asarray(params["sigma_b"], jnp.float32).reshape(()),
        ]).reshape(1, 2)
        out_p = pl.pallas_call(
            functools.partial(_fact_train_kernel, dot_dtype=dot_dtype),
            out_shape=out_shape,
            grid=grid,
            in_specs=[
                pl.BlockSpec(memory_space=pltpu.SMEM),              # sigmas
                x_spec,                                             # x
                w_spec,                                             # u_w
                pl.BlockSpec((1, tk), lambda i, j, k: (0, k)),      # eps_i row
                pl.BlockSpec((tn, 1), lambda i, j, k: (j, 0)),      # eps_j col
                row_a_spec,                                         # u_b
                row_a_spec,                                         # eps_j row
            ],
            out_specs=out_spec,
            scratch_shapes=scratch,
            compiler_params=cparams,
        )(sig, x_p, uw_p, ei_p, ejc_p, ub_p, ejr_p)
    else:
        sw_p = _pad2(params["sigma_w"], A_pad, D_pad)
        ew_p = _pad2(params["eps_w"], A_pad, D_pad)
        sb_p = _pad2(params["sigma_b"].reshape(1, A), 1, A_pad)
        eb_p = _pad2(params["eps_b"].reshape(1, A), 1, A_pad)
        out_p = pl.pallas_call(
            functools.partial(_full_train_kernel, dot_dtype=dot_dtype),
            out_shape=out_shape,
            grid=grid,
            in_specs=[x_spec, w_spec, w_spec, w_spec,
                      row_a_spec, row_a_spec, row_a_spec],
            out_specs=out_spec,
            scratch_shapes=scratch,
            compiler_params=cparams,
        )(x_p, uw_p, sw_p, ew_p, ub_p, sb_p, eb_p)

    return out_p[:B, :A]


# ------------------------- Parameter / noise setup ---------------------------

def _f(x):
    # f(x) = sign(x) * sqrt(|x|)
    return jnp.sign(x) * jnp.sqrt(jnp.abs(x))


def init_noisy_params(key, dim_space, nb_actions, sigma=0.5, factorized=True):
    k_uw, k_ub, k_ei, k_ej = jax.random.split(key, 4)
    if factorized:
        borne = 1.0 / jnp.sqrt(float(dim_space))
        value = sigma / jnp.sqrt(float(dim_space))
        u_w = jax.random.uniform(k_uw, (nb_actions, dim_space),
                                 minval=-borne, maxval=borne, dtype=jnp.float32)
        u_b = jax.random.uniform(k_ub, (nb_actions,),
                                 minval=-borne, maxval=borne, dtype=jnp.float32)
        eps_i = _f(jax.random.normal(k_ei, (dim_space,), jnp.float32))
        eps_j = _f(jax.random.normal(k_ej, (nb_actions,), jnp.float32))
        return dict(u_w=u_w, u_b=u_b,
                    sigma_w=jnp.asarray(value, jnp.float32),
                    sigma_b=jnp.asarray(value, jnp.float32),
                    eps_i=eps_i, eps_j=eps_j)
    else:
        borne = jnp.sqrt(3.0 / float(dim_space))
        u_w = jax.random.uniform(k_uw, (nb_actions, dim_space),
                                 minval=-borne, maxval=borne, dtype=jnp.float32)
        sigma_w = jnp.full((nb_actions, dim_space), sigma, jnp.float32)
        u_b = jax.random.uniform(k_ub, (nb_actions,),
                                 minval=-borne, maxval=borne, dtype=jnp.float32)
        sigma_b = jnp.full((nb_actions,), sigma, jnp.float32)
        eps_w = jax.random.normal(k_ei, (nb_actions, dim_space), jnp.float32)
        eps_b = jax.random.normal(k_ej, (nb_actions,), jnp.float32)
        return dict(u_w=u_w, sigma_w=sigma_w, u_b=u_b, sigma_b=sigma_b,
                    eps_w=eps_w, eps_b=eps_b)


# ---------------------------------- Main -------------------------------------

if __name__ == "__main__":
    dim_space = 32      # input_shape
    nb_actions = 16     # output_shape
    batch = 8

    key = jax.random.PRNGKey(0)
    k_params, k_x = jax.random.split(key)
    params = init_noisy_params(k_params, dim_space, nb_actions,
                               sigma=0.5, factorized=True)
    x = jax.random.normal(k_x, (batch, dim_space), jnp.float32)

    # Pallas kernel (bf16 MXU feed, f32 accumulation) — default fast path.
    out_train = jax.block_until_ready(noisy_forward(x, params, training=True))
    out_eval = jax.block_until_ready(noisy_forward(x, params, training=False))

    # Pure-JAX references.
    eps_w_ref = jnp.outer(params["eps_j"], params["eps_i"])
    w_eff = params["u_w"] + params["sigma_w"] * eps_w_ref
    b_eff = params["u_b"] + params["sigma_b"] * params["eps_j"]
    ref_train = x @ w_eff.T + b_eff
    ref_eval = x @ params["u_w"].T + params["u_b"]

    assert out_train.shape == (batch, nb_actions)
    assert out_eval.shape == (batch, nb_actions)
    # bf16 operands with f32 accumulation -> loosened tolerance vs f32 ref.
    assert jnp.allclose(out_train, ref_train, atol=5e-2, rtol=5e-2)
    assert jnp.allclose(out_eval, ref_eval, atol=5e-2, rtol=5e-2)

    # Exact f32 path (dot_dtype=float32) -> tight tolerance.
    out_train_f32 = noisy_forward(x, params, training=True,
                                  dot_dtype=jnp.float32)
    out_eval_f32 = noisy_forward(x, params, training=False,
                                 dot_dtype=jnp.float32)
    assert jnp.allclose(out_train_f32, ref_train, atol=1e-4, rtol=1e-4)
    assert jnp.allclose(out_eval_f32, ref_eval, atol=1e-4, rtol=1e-4)

    # Non-factorized (independent noise) path.
    params_nf = init_noisy_params(k_params, dim_space, nb_actions,
                                  sigma=0.5, factorized=False)
    out_nf = noisy_forward(x, params_nf, training=True, dot_dtype=jnp.float32)
    w_eff_nf = params_nf["u_w"] + params_nf["sigma_w"] * params_nf["eps_w"]
    b_eff_nf = params_nf["u_b"] + params_nf["sigma_b"] * params_nf["eps_b"]
    assert jnp.allclose(out_nf, x @ w_eff_nf.T + b_eff_nf, atol=1e-4, rtol=1e-4)

    jax.block_until_ready((out_train_f32, out_eval_f32, out_nf))
    print("KERNEL_OK")
</pallas_src>

<mosaic_0001>
module attributes {stable_mosaic.version = 11 : i64} {
  func.func @_fact_train_kernel(%arg0: i32, %arg1: i32, %arg2: i32, %arg3: memref<1x2xf32, #tpu.memory_space<smem>>, %arg4: memref<8x128xf32, #tpu.memory_space<vmem>>, %arg5: memref<128x128xf32, #tpu.memory_space<vmem>>, %arg6: memref<1x128xf32, #tpu.memory_space<vmem>>, %arg7: memref<128x1xf32, #tpu.memory_space<vmem>>, %arg8: memref<1x128xf32, #tpu.memory_space<vmem>>, %arg9: memref<1x128xf32, #tpu.memory_space<vmem>>, %arg10: memref<8x128xf32, #tpu.memory_space<vmem>>, %arg11: memref<8x128xf32, #tpu.memory_space<vmem>>) attributes {dimension_semantics = [#tpu.dimension_semantics<parallel>, #tpu.dimension_semantics<parallel>, #tpu.dimension_semantics<arbitrary>], iteration_bounds = array<i64: 1, 1, 1>, scalar_prefetch = 0 : i64, scratch_operands = 1 : i64, tpu.core_type = #tpu.core_type<tc>, window_params = [{transform_indices = @transform_0, window_bounds = array<i64: 1, 2>}, {transform_indices = @transform_1, window_bounds = array<i64: 8, 128>}, {transform_indices = @transform_2, window_bounds = array<i64: 128, 128>}, {transform_indices = @transform_3, window_bounds = array<i64: 1, 128>}, {transform_indices = @transform_4, window_bounds = array<i64: 128, 1>}, {transform_indices = @transform_5, window_bounds = array<i64: 1, 128>}, {transform_indices = @transform_6, window_bounds = array<i64: 1, 128>}, {transform_indices = @transform_7, window_bounds = array<i64: 8, 128>}]} {
    %c0_i32 = arith.constant 0 : i32
    %0 = arith.cmpi eq, %arg2, %c0_i32 : i32
    %1 = arith.extui %0 : i1 to i32
    %c0_i32_0 = arith.constant 0 : i32
    %2 = arith.cmpi ne, %1, %c0_i32_0 : i32
    scf.if %2 {
      %cst_16 = arith.constant 0.000000e+00 : f32
      %23 = vector.broadcast %cst_16 : f32 to vector<8x128xf32>
      %c0_17 = arith.constant 0 : index
      %c0_18 = arith.constant 0 : index
      %24 = vector.load %arg11[%c0_17, %c0_18] : memref<8x128xf32, #tpu.memory_space<vmem>>, vector<8x128xf32>
      tpu.vector_store %arg11[%c0_17, %c0_18], %23 {strides = array<i32>} : memref<8x128xf32, #tpu.memory_space<vmem>>, vector<8x128xf32>,
    } else {
    }
    %c0 = arith.constant 0 : index
    %c0_1 = arith.constant 0 : index
    %3 = memref.load %arg3[%c0, %c0_1] : memref<1x2xf32, #tpu.memory_space<smem>>
    %c0_2 = arith.constant 0 : index
    %c0_3 = arith.constant 0 : index
    %4 = vector.load %arg5[%c0_2, %c0_3] : memref<128x128xf32, #tpu.memory_space<vmem>>, vector<128x128xf32>
    %c0_4 = arith.constant 0 : index
    %c0_5 = arith.constant 0 : index
    %5 = vector.load %arg7[%c0_4, %c0_5] : memref<128x1xf32, #tpu.memory_space<vmem>>, vector<128x1xf32>
    %c0_6 = arith.constant 0 : index
    %c0_7 = arith.constant 0 : index
    %6 = vector.load %arg6[%c0_6, %c0_7] : memref<1x128xf32, #tpu.memory_space<vmem>>, vector<1x128xf32>
    %7 = vector.broadcast %5 : vector<128x1xf32> to vector<128x128xf32>
    %8 = vector.broadcast %6 : vector<1x128xf32> to vector<128x128xf32>
    %9 = arith.mulf %7, %8 : vector<128x128xf32>
    %10 = vector.broadcast %3 : f32 to vector<128x128xf32>
    %11 = arith.mulf %10, %9 : vector<128x128xf32>
    %12 = arith.addf %4, %11 : vector<128x128xf32>
    %c0_8 = arith.constant 0 : index
    %c0_9 = arith.constant 0 : index
    %13 = vector.load %arg11[%c0_8, %c0_9] : memref<8x128xf32, #tpu.memory_space<vmem>>, vector<8x128xf32>
    %c0_10 = arith.constant 0 : index
    %c0_11 = arith.constant 0 : index
    %14 = vector.load %arg4[%c0_10, %c0_11] : memref<8x128xf32, #tpu.memory_space<vmem>>, vector<8x128xf32>
    %15 = arith.truncf %14 : vector<8x128xf32> to vector<8x128xbf16>
    %16 = arith.truncf %12 : vector<128x128xf32> to vector<128x128xbf16>
    %cst = arith.constant dense<0.000000e+00> : vector<8x128xf32>
    %17 = tpu.matmul %15, %16, %cst {dimension_numbers = #tpu.dot_dimension_numbers<[1], [1], [0], [0], [0, 0, 1, 0], [], []>} : vector<8x128xbf16>, vector<128x128xbf16>, vector<8x128xf32> -> vector<8x128xf32>
    %18 = arith.addf %13, %17 : vector<8x128xf32>
    %c0_12 = arith.constant 0 : index
    %c0_13 = arith.constant 0 : index
    %19 = vector.load %arg11[%c0_12, %c0_13] : memref<8x128xf32, #tpu.memory_space<vmem>>, vector<8x128xf32>
    tpu.vector_store %arg11[%c0_12, %c0_13], %18 {strides = array<i32>} : memref<8x128xf32, #tpu.memory_space<vmem>>, vector<8x128xf32>,
    %c0_i32_14 = arith.constant 0 : i32
    %20 = arith.cmpi eq, %arg2, %c0_i32_14 : i32
    %21 = arith.extui %20 : i1 to i32
    %c0_i32_15 = arith.constant 0 : i32
    %22 = arith.cmpi ne, %21, %c0_i32_15 : i32
    scf.if %22 {
      %c0_16 = arith.constant 0 : index
      %c1 = arith.constant 1 : index
      %23 = memref.load %arg3[%c0_16, %c1] : memref<1x2xf32, #tpu.memory_space<smem>>
      %c0_17 = arith.constant 0 : index
      %c0_18 = arith.constant 0 : index
      %24 = vector.load %arg8[%c0_17, %c0_18] : memref<1x128xf32, #tpu.memory_space<vmem>>, vector<1x128xf32>
      %c0_19 = arith.constant 0 : index
      %c0_20 = arith.constant 0 : index
      %25 = vector.load %arg9[%c0_19, %c0_20] : memref<1x128xf32, #tpu.memory_space<vmem>>, vector<1x128xf32>
      %26 = vector.broadcast %23 : f32 to vector<1x128xf32>
      %27 = arith.mulf %26, %25 : vector<1x128xf32>
      %28 = arith.addf %24, %27 : vector<1x128xf32>
      %c0_21 = arith.constant 0 : index
      %c0_22 = arith.constant 0 : index
      %29 = vector.load %arg11[%c0_21, %c0_22] : memref<8x128xf32, #tpu.memory_space<vmem>>, vector<8x128xf32>
      %30 = vector.broadcast %28 : vector<1x128xf32> to vector<8x128xf32>
      %31 = arith.addf %29, %30 : vector<8x128xf32>
      %c0_23 = arith.constant 0 : index
      %c0_24 = arith.constant 0 : index
      %32 = vector.load %arg10[%c0_23, %c0_24] : memref<8x128xf32, #tpu.memory_space<vmem>>, vector<8x128xf32>
      tpu.vector_store %arg10[%c0_23, %c0_24], %31 {strides = array<i32>} : memref<8x128xf32, #tpu.memory_space<vmem>>, vector<8x128xf32>,
    } else {
    }
    return
  }
  func.func @transform_0(%arg0: i32, %arg1: i32, %arg2: i32) -> (i32, i32) {
    %c0_i32 = arith.constant 0 : i32
    %c0_i32_0 = arith.constant 0 : i32
    %c0_i32_1 = arith.constant 0 : i32
    return %c0_i32, %c0_i32_0 : i32, i32
  }
  func.func @transform_1(%arg0: i32, %arg1: i32, %arg2: i32) -> (i32, i32) {
    %c0_i32 = arith.constant 0 : i32
    return %arg0, %arg2 : i32, i32
  }
  func.func @transform_2(%arg0: i32, %arg1: i32, %arg2: i32) -> (i32, i32) {
    %c0_i32 = arith.constant 0 : i32
    return %arg1, %arg2 : i32, i32
  }
  func.func @transform_3(%arg0: i32, %arg1: i32, %arg2: i32) -> (i32, i32) {
    %c0_i32 = arith.constant 0 : i32
    %c0_i32_0 = arith.constant 0 : i32
    return %c0_i32, %arg2 : i32, i32
  }
  func.func @transform_4(%arg0: i32, %arg1: i32, %arg2: i32) -> (i32, i32) {
    %c0_i32 = arith.constant 0 : i32
    %c0_i32_0 = arith.constant 0 : i32
    return %arg1, %c0_i32 : i32, i32
  }
  func.func @transform_5(%arg0: i32, %arg1: i32, %arg2: i32) -> (i32, i32) {
    %c0_i32 = arith.constant 0 : i32
    %c0_i32_0 = arith.constant 0 : i32
    return %c0_i32, %arg1 : i32, i32
  }
  func.func @transform_6(%arg0: i32, %arg1: i32, %arg2: i32) -> (i32, i32) {
    %c0_i32 = arith.constant 0 : i32
    %c0_i32_0 = arith.constant 0 : i32
    return %c0_i32, %arg1 : i32, i32
  }
  func.func @transform_7(%arg0: i32, %arg1: i32, %arg2: i32) -> (i32, i32) {
    %c0_i32 = arith.constant 0 : i32
    return %arg0, %arg1 : i32, i32
  }
}

</mosaic_0001>

<bundles_post_ra>
// kernel: noisy_forward.1
= control target key start
LH: loop header
LB: loop body
LE: loop exit
PB: predicated region body
PF: predicated region fallthrough
CT: control target
= control target key end

     0   :  { %12 = vsyncpa [#allocation5], 0  ;;  %s579_s0 = inlined_call_operand.vmem [shape: f32[1,2], index: 0, kind: input, shape index: {}]   ;;  %s580_s1 = inlined_call_operand.vmem [shape: f32[8,128], index: 1, kind: input, shape index: {}]   ;;  %s581_s2 = inlined_call_operand.vmem [shape: f32[128,128], index: 2, kind: input, shape index: {}]   ;;  %s582_s3 = inlined_call_operand.vmem [shape: f32[1,128], index: 3, kind: input, shape index: {}]   ;;  %s583_s4 = inlined_call_operand.vmem [shape: f32[128,1], index: 4, kind: input, shape index: {}]   ;;  %s584_s5 = inlined_call_operand.vmem [shape: f32[1,128], index: 5, kind: input, shape index: {}]   ;;  %s585_s6 = inlined_call_operand.vmem [shape: f32[1,128], index: 6, kind: input, shape index: {}]   ;;  %s586_s7 = inlined_call_operand.hbm [shape: f32[8,128], index: 7, kind: output, shape index: {}]  }
   0x1   :  { %13 = vsyncpa [#allocation4], 0  ;;  %s20_s26 = sshll.u32 %s579_s0, 4  ;;  %s21_s26 = int_to_ptr.vmem [resolvable:$true] %s20_s26 }
   0x2   :  { %s339_s27 = scalar_lea.vmem %s21_s26, 16  ;;  %p344_p1 = scmp.lt.s32.totalorder %s21_s26, %s21_s26 }
   0x3   :  { %p340_p0 = scmp.ne.s32.totalorder %s21_s26, %s339_s27  ;;  %p345_p2 = scmp.lt.s32.totalorder %s339_s27, %s339_s27 }
   0x5   :  { %p346_p3 = por %p345_p2, %p344_p1 }
   0x7   :  { %p347_p4 = pnand %p346_p3, %p340_p0 }
   0x9   :  { %350 = shalt.err (!%p347_p4)
}
   0xa   :  { %s375_s28 = smov [#allocation3]  }
   0xb   :  { %23 = dma.vmem_to_smem %s21_s26, 16, %s375_s28, [#allocation5]  }
   0xc   :  { %371 = dma.done.wait [#allocation5], 16  }
   0xd   :  { %372 = vsyncadd [#allocation5], 4294967280 }
   0xe   :  { %39 = sfence }
   0xf   :  { %v77_v0 = vld [vmem:[%s583_s4 + $0x70] sm:$0xff]  ;;  %v75_v1 = vld [vmem:[%s583_s4 + $0x60] sm:$0xff]  ;;  %v376_v2 = vmov 0   ;;  %v78_v3 = vld [vmem:[%s583_s4 + $0x78] sm:$0xff]  ;;  %v377_v7 = vmov 0.0   ;;  %vm378_vm0 = vmmov 0  }
  0x10   :  { %338 = vset.pattern.permute.xlu1 %v376_v2  ;;  %337 = vset.pattern.permute.xlu0 %v376_v2  ;;  %v76_v4 = vld [vmem:[%s583_s4 + $0x68] sm:$0xff]  ;;  %v74_v5 = vld [vmem:[%s583_s4 + $0x58] sm:$0xff]  ;;  %v73_v6 = vld [vmem:[%s583_s4 + $0x50] sm:$0xff]  ;;  %s46_s13 = sld [smem:[#allocation3]]  ;;  %s379_s26 = smov [#allocation6]  }
  0x11   :  { %152 = vperm.xlu0 %337, %v77_v0   ;;  %142 = vperm.xlu1 %338, %v75_v1   ;;  %v72_v8 = vld [vmem:[%s583_s4 + $0x48] sm:$0xff]  ;;  %v71_v9 = vld [vmem:[%s583_s4 + $0x40] sm:$0xff]  ;;  %v70_v10 = vld [vmem:[%s583_s4 + $0x38] sm:$0xff]  ;;  %s302_s22 = sld [smem:[#allocation3 + $0x1]] }
  0x12   :  { %312 = vmatprep.subr.bf16.mxu0 %v377_v7  ;;  %v69_v11 = vld [vmem:[%s583_s4 + $0x30] sm:$0xff]  ;;  %v68_v12 = vld [vmem:[%s583_s4 + $0x28] sm:$0xff]  ;;  %v67_v13 = vld [vmem:[%s583_s4 + $0x20] sm:$0xff]  ;;  %328 = vmatprep.mubr.msk.bf16.mxu0 %vm378_vm0, %v377_v7 }
  0x13   :  { %v66_v14 = vld [vmem:[%s583_s4 + $0x18] sm:$0xff]  ;;  %v65_v15 = vld [vmem:[%s583_s4 + $0x10] sm:$0xff]  ;;  %v64_v16 = vld [vmem:[%s583_s4 + $0x8] sm:$0xff] }
  0x14   :  { %v63_v17 = vld [vmem:[%s583_s4] sm:$0xff]  ;;  %v61_v27 = vld [vmem:[%s581_s2 + $0x70] sm:$0xff]  ;;  %v62_v28 = vld [vmem:[%s581_s2 + $0x78] sm:$0xff] }
  0x15   :  { %157 = vperm.xlu0 %337, %v78_v3   ;;  %147 = vperm.xlu1 %338, %v76_v4   ;;  %v476_v18 = vld [vmem:[%s582_s3] ss:$0 sm:$0xff]  ;;  %v60_v38 = vld [vmem:[%s581_s2 + $0x68] sm:$0xff]  ;;  %v58_v48 = vld [vmem:[%s581_s2 + $0x58] sm:$0xff] }
  0x16   :  { %v479_v22 = vstv %s46_s13  ;;  %v59_v37 = vld [vmem:[%s581_s2 + $0x60] sm:$0xff]  ;;  %v57_v49 = vld [vmem:[%s581_s2 + $0x50] sm:$0xff]  ;;  %v56_v59 = vld [vmem:[%s581_s2 + $0x48] sm:$0xff] }
  0x17   :  { %v55_v60 = vld [vmem:[%s581_s2 + $0x40] sm:$0xff] }
  0x19   :  { %137 = vperm.xlu1 %338, %v74_v5   ;;  %132 = vperm.xlu0 %337, %v73_v6   ;;  %v54_v6 = vld [vmem:[%s581_s2 + $0x38] sm:$0xff] }
  0x1d   :  { %127 = vperm.xlu1 %338, %v72_v8   ;;  %122 = vperm.xlu0 %337, %v71_v9   ;;  %v53_v8 = vld [vmem:[%s581_s2 + $0x30] sm:$0xff] }
  0x21   :  { %117 = vperm.xlu1 %338, %v70_v10   ;;  %112 = vperm.xlu0 %337, %v69_v11  }
  0x25   :  { %107 = vperm.xlu1 %338, %v68_v12   ;;  %102 = vperm.xlu0 %337, %v67_v13  }
  0x29   :  { %97 = vperm.xlu1 %338, %v66_v14   ;;  %92 = vperm.xlu0 %337, %v65_v15  }
  0x2d   :  { %87 = vperm.xlu1 %338, %v64_v16   ;;  %82 = vperm.xlu0 %337, %v63_v17  }
  0x8c   :  { %v153_v19 = vpop.permute.xlu0 %152  ;;  %v143_v20 = vpop.permute.xlu1 %142 }
  0x8d   :  { %v180_v21 = vmul.f32 %v476_v18, %v153_v19  ;;  %v178_v29 = vmul.f32 %v476_v18, %v143_v20  ;;  %v52_v19 = vld [vmem:[%s581_s2 + $0x28] sm:$0xff]  ;;  %v51_v20 = vld [vmem:[%s581_s2 + $0x20] sm:$0xff] }
  0x8f   :  { %v197_v24 = vmul.f32 %v479_v22, %v180_v21  ;;  %v195_v34 = vmul.f32 %v479_v22, %v178_v29 }
  0x90   :  { %v158_v23 = vpop.permute.xlu0 %157  ;;  %v148_v26 = vpop.permute.xlu1 %147 }
  0x91   :  { %v181_v25 = vmul.f32 %v476_v18, %v158_v23  ;;  %v179_v31 = vmul.f32 %v476_v18, %v148_v26  ;;  %v213_v32 = vadd.f32 %v197_v24, %v61_v27  ;;  %v211_v41 = vadd.f32 %v195_v34, %v59_v37 }
  0x93   :  { %v198_v30 = vmul.f32 %v479_v22, %v181_v25  ;;  %v196_v35 = vmul.f32 %v479_v22, %v179_v31  ;;  %v50_v31 = vld [vmem:[%s581_s2 + $0x18] sm:$0xff] }
  0x94   :  { %v138_v39 = vpop.permute.xlu1 %137  ;;  %v133_v40 = vpop.permute.xlu0 %132 }
  0x95   :  { %v214_v33 = vadd.f32 %v198_v30, %v62_v28  ;;  %v212_v42 = vadd.f32 %v196_v35, %v60_v38  ;;  %v177_v43 = vmul.f32 %v476_v18, %v138_v39  ;;  %v176_v44 = vmul.f32 %v476_v18, %v133_v40 }
  0x97   :  { %v225_v36 = vpack.c.bf16 %v214_v33, %v213_v32  ;;  %v194_v45 = vmul.f32 %v479_v22, %v177_v43  ;;  %v193_v46 = vmul.f32 %v479_v22, %v176_v44  ;;  %v224_v47 = vpack.c.bf16 %v212_v42, %v211_v41  ;;  %v49_v32 = vld [vmem:[%s581_s2 + $0x10] sm:$0xff]  ;;  %v48_v42 = vld [vmem:[%s581_s2 + $0x8] sm:$0xff]  ;;  %v47_v43 = vld [vmem:[%s581_s2] sm:$0xff] }
  0x98   :  { %v128_v50 = vpop.permute.xlu1 %127  ;;  %v123_v51 = vpop.permute.xlu0 %122 }
  0x99   :  { %313 = vmatpush3.bf16.xpose.msra.mxu0 %v225_v36  ;;  %v210_v52 = vadd.f32 %v194_v45, %v58_v48  ;;  %v209_v53 = vadd.f32 %v193_v46, %v57_v49  ;;  %v175_v54 = vmul.f32 %v476_v18, %v128_v50  ;;  %v174_v55 = vmul.f32 %v476_v18, %v123_v51  ;;  %v273_v48 = vld [vmem:[%s585_s6] sm:$0x1] }
  0x9a   :  { %314 = vmatprep.subr.bf16.mxu0 %v377_v7  ;;  %v274_v49 = vstv %s302_s22 }
  0x9b   :  { %v192_v56 = vmul.f32 %v479_v22, %v175_v54  ;;  %v191_v57 = vmul.f32 %v479_v22, %v174_v55  ;;  %v223_v58 = vpack.c.bf16 %v210_v52, %v209_v53  ;;  %v275_v50 = vmul.f32 %v274_v49, %v273_v48 }
  0x9c   :  { %v118_v61 = vpop.permute.xlu1 %117  ;;  %v113_v62 = vpop.permute.xlu0 %112 }
  0x9d   :  { %v208_v63 = vadd.f32 %v192_v56, %v56_v59  ;;  %v207_v0 = vadd.f32 %v191_v57, %v55_v60  ;;  %v173_v1 = vmul.f32 %v476_v18, %v118_v61  ;;  %v172_v2 = vmul.f32 %v476_v18, %v113_v62 }
  0x9f   :  { %v190_v3 = vmul.f32 %v479_v22, %v173_v1  ;;  %v189_v4 = vmul.f32 %v479_v22, %v172_v2  ;;  %v222_v5 = vpack.c.bf16 %v208_v63, %v207_v0 }
  0xa0   :  { %v108_v9 = vpop.permute.xlu1 %107  ;;  %v103_v10 = vpop.permute.xlu0 %102 }
  0xa1   :  { %315 = vmatpush3.bf16.xpose.msra.mxu0 %v224_v47  ;;  %v206_v11 = vadd.f32 %v190_v3, %v54_v6  ;;  %v205_v12 = vadd.f32 %v189_v4, %v53_v8  ;;  %v171_v13 = vmul.f32 %v476_v18, %v108_v9  ;;  %v170_v14 = vmul.f32 %v476_v18, %v103_v10 }
  0xa2   :  { %316 = vmatprep.subr.bf16.mxu0 %v377_v7  ;;  %v279_v47 = vlaneseq }
  0xa3   :  { %v188_v15 = vmul.f32 %v479_v22, %v171_v13  ;;  %v187_v16 = vmul.f32 %v479_v22, %v170_v14  ;;  %v221_v17 = vpack.c.bf16 %v206_v11, %v205_v12 }
  0xa4   :  { %v98_v21 = vpop.permute.xlu1 %97  ;;  %v93_v23 = vpop.permute.xlu0 %92  ;;  %v280_v51 = vshrl.u32 %v279_v47, 7 }
  0xa5   :  { %v204_v24 = vadd.f32 %v188_v15, %v52_v19  ;;  %v203_v25 = vadd.f32 %v187_v16, %v51_v20  ;;  %v169_v26 = vmul.f32 %v476_v18, %v98_v21  ;;  %v168_v27 = vmul.f32 %v476_v18, %v93_v23 }
  0xa6   :  { %v281_v53 = vsub.s32 0, %v280_v51 }
  0xa7   :  { %v186_v28 = vmul.f32 %v479_v22, %v169_v26  ;;  %v185_v29 = vmul.f32 %v479_v22, %v168_v27  ;;  %v220_v30 = vpack.c.bf16 %v204_v24, %v203_v25 }
  0xa8   :  { %v88_v33 = vpop.permute.xlu1 %87  ;;  %v83_v34 = vpop.permute.xlu0 %82 }
  0xa9   :  { %317 = vmatpush3.bf16.xpose.msra.mxu0 %v223_v58  ;;  %v202_v35 = vadd.f32 %v186_v28, %v50_v31  ;;  %v201_v36 = vadd.f32 %v185_v29, %v49_v32  ;;  %v167_v37 = vmul.f32 %v476_v18, %v88_v33  ;;  %v166_v38 = vmul.f32 %v476_v18, %v83_v34  ;;  %v216_v18 = vld [vmem:[%s580_s1] sm:$0xff]  ;;  %s292_s1 = sshll.u32 %s379_s26, 4  ;;  %s293_s1 = int_to_ptr.vmem [resolvable:$true] %s292_s1 }
  0xaa   :  { %318 = vmatprep.subr.bf16.mxu0 %v377_v7  ;;  %s351_s27 = scalar_lea.vmem %s293_s1, 128  ;;  %p356_p6 = scmp.lt.s32.totalorder %s293_s1, %s293_s1 }
  0xab   :  { %v184_v39 = vmul.f32 %v479_v22, %v167_v37  ;;  %v183_v40 = vmul.f32 %v479_v22, %v166_v38  ;;  %v219_v41 = vpack.c.bf16 %v202_v35, %v201_v36  ;;  %v217_v22 = vpack.c.bf16 %v216_v18, %v216_v18  ;;  %p352_p5 = scmp.ne.s32.totalorder %s293_s1, %s351_s27  ;;  %p357_p7 = scmp.lt.s32.totalorder %s351_s27, %s351_s27 }
  0xad   :  { %v200_v44 = vadd.f32 %v184_v39, %v48_v42  ;;  %v199_v45 = vadd.f32 %v183_v40, %v47_v43  ;;  %p358_p8 = por %p357_p7, %p356_p6 }
  0xaf   :  { %v218_v46 = vpack.c.bf16 %v200_v44, %v199_v45  ;;  %p359_p9 = pnand %p358_p8, %p352_p5 }
  0xb1   :  { %319 = vmatpush3.bf16.xpose.msra.mxu0 %v222_v5 }
  0xb2   :  { %320 = vmatprep.subr.bf16.mxu0 %v377_v7 }
  0xb9   :  { %321 = vmatpush3.bf16.xpose.msra.mxu0 %v221_v17 }
  0xba   :  { %322 = vmatprep.subr.bf16.mxu0 %v377_v7 }
  0xc1   :  { %323 = vmatpush3.bf16.xpose.msra.mxu0 %v220_v30 }
  0xc2   :  { %324 = vmatprep.subr.bf16.mxu0 %v377_v7 }
  0xc9   :  { %325 = vmatpush3.bf16.xpose.msra.mxu0 %v219_v41 }
  0xca   :  { %326 = vmatprep.subr.bf16.mxu0 %v377_v7  ;;  %v272_v7 = vld [vmem:[%s584_s5] sm:$0x1] }
  0xcb   :  { %v276_v52 = vadd.f32 %v275_v50, %v272_v7 }
  0xcd   :  { %v282_v54 = vrot.slane %v276_v52, %v281_v53 }
  0xd1   :  { %327 = vmatpush3.bf16.xpose.msra.mxu0 %v218_v46 }
  0xd8   :  { %329 = vmatmul.mubr.bf16.vlgmr.msra.gmra.mxu0 %v217_v22 }
 0x198   :  { %v260_v55 = vpop.f32.mrf.mxu0 }
 0x199   :  { %v284_v56 = vadd.f32 %v282_v54, %v260_v55 }
 0x19a   :  { %v330_v57 = vpop.f32.mrf.mxu0 }
 0x19b   :  { %285 = vst [vmem:[#allocation6] sm:$0xff] %v284_v56 }
 0x19c   :  { %v263_v58 = vpop.f32.mrf.mxu0 }
 0x19d   :  { %362 = shalt.err (!%p359_p9)
}
 0x19e   :  { %295 = dma.vmem_to_hbm [thread:$0]  %s293_s1, 128, %s586_s7, [#allocation4]   ;;  %v331_v59 = vpop.f32.mrf.mxu0 }
 0x19f   :  { %373 = dma.done.wait [#allocation4], 128  }
 0x1a0   :  { %374 = vsyncadd [#allocation4], 4294967168 }
 0x1a1   :  { %299 = vsyncpa [#allocation4], 1 }
 0x1a2   :  { %300 = vsyncpa [#allocation5], 1 }

</bundles_post_ra>
